<compile_context>
chip_gen: v7x
topology: tpu7x:2x2x1
jax: 0.10.0
libtpu: 0.0.40
codegen_flags: <defaults>
</compile_context>

<pallas_src>
import functools
import math

import jax
import jax.numpy as jnp
from jax.experimental import pallas as pl
from jax.experimental.pallas import tpu as pltpu

_MAX_TK = 2048                    # single-block K up to this size (covers this model)
_VMEM_LIMIT = 48 * 1024 * 1024    # fits v7x's 64 MiB physical VMEM with headroom


def _round_up(x, m):
    return -(-x // m) * m


# ----------------------------- Pallas kernels -----------------------------

def _matmul_bias_act_kernel(x_ref, w_ref, b_ref, o_ref, acc_ref, *, slope):
    """Tiled conv-as-matmul: acc += x @ w; epilogue adds bias (+ leaky-relu)."""
    k = pl.program_id(2)

    @pl.when(k == 0)
    def _():
        acc_ref[...] = jnp.zeros_like(acc_ref)

    acc_ref[...] += jnp.dot(x_ref[...], w_ref[...],
                            preferred_element_type=jnp.float32)

    @pl.when(k == pl.num_programs(2) - 1)
    def _():
        acc = acc_ref[...] + b_ref[...].astype(jnp.float32)
        if slope is not None:
            acc = jnp.where(acc >= 0.0, acc, slope * acc)
        o_ref[...] = acc.astype(o_ref.dtype)


def _stft_mag_kernel(fr_ref, dr_ref, di_ref, o_ref):
    """Magnitude spectrogram: |frames @ (cos - i sin)| (DFT matrices resident)."""
    f = fr_ref[...]
    re = jnp.dot(f, dr_ref[...], preferred_element_type=jnp.float32)
    im = jnp.dot(f, di_ref[...], preferred_element_type=jnp.float32)
    # TODO(synk): if this forward is ever differentiated, add an eps under the sqrt.
    o_ref[...] = jnp.sqrt(re * re + im * im)


def _conv1out_kernel(x_ref, w_ref, b_ref, o_ref):
    """Cout=1 conv as VPU multiply + lane reduction (no MXU lane padding waste)."""
    x = x_ref[...].astype(jnp.float32)
    w = w_ref[...]                                  # (1, K) f32, broadcasts
    o_ref[...] = jnp.sum(x * w, axis=-1, keepdims=True) + b_ref[...]


# ----------------------------- kernel wrappers -----------------------------

def _matmul_bias_act(patches, w, b, *, slope):
    """patches(M,K) @ w(K,N) + b(N), optional leaky-relu. bf16 inputs, f32 acc."""
    M, K = patches.shape
    _, N = w.shape

    tm = M if M <= 512 else 512
    tn = N if N <= 512 else 256
    if K <= _MAX_TK:
        tk, Kp = K, K
    else:  # not hit for this model; kept for generality
        tk = _MAX_TK
        Kp = _round_up(K, tk)
        patches = jnp.pad(patches, ((0, 0), (0, Kp - K)))
        w = jnp.pad(w, ((0, Kp - K), (0, 0)))

    grid = (pl.cdiv(M, tm), pl.cdiv(N, tn), Kp // tk)
    b2 = b.reshape(1, N).astype(jnp.float32)

    return pl.pallas_call(
        functools.partial(_matmul_bias_act_kernel, slope=slope),
        grid=grid,
        in_specs=[
            pl.BlockSpec((tm, tk), lambda i, j, k: (i, k)),
            pl.BlockSpec((tk, tn), lambda i, j, k: (k, j)),
            pl.BlockSpec((1, tn), lambda i, j, k: (0, j)),
        ],
        out_specs=pl.BlockSpec((tm, tn), lambda i, j, k: (i, j)),
        out_shape=jax.ShapeDtypeStruct((M, N), jnp.float32),
        scratch_shapes=[pltpu.VMEM((tm, tn), jnp.float32)],
        compiler_params=pltpu.CompilerParams(
            dimension_semantics=("parallel", "parallel", "arbitrary"),
            vmem_limit_bytes=_VMEM_LIMIT),
        cost_estimate=pl.CostEstimate(
            flops=2 * M * K * N,
            transcendentals=0,
            bytes_accessed=M * K * 2 + K * N * 2 + M * N * 4 + N * 4),
    )(patches.astype(jnp.bfloat16), w.astype(jnp.bfloat16), b2)


def _im2col_nhwc(x, kh, kw, stride, padding):
    """NHWC im2col -> (patches[M, kh*kw*C] bf16, (n, oh, ow))."""
    n, h, wd, c = x.shape
    sh, sw = stride
    ph, pw = padding
    xp = jnp.pad(x, ((0, 0), (ph, ph), (pw, pw), (0, 0)))
    oh = (h + 2 * ph - kh) // sh + 1
    ow = (wd + 2 * pw - kw) // sw + 1
    rows = (jnp.arange(oh) * sh)[:, None] + jnp.arange(kh)[None, :]       # (oh, kh)
    cols = (jnp.arange(ow) * sw)[:, None] + jnp.arange(kw)[None, :]       # (ow, kw)
    p = xp[:, rows[:, None, :, None], cols[None, :, None, :], :]          # (n,oh,ow,kh,kw,c)
    p = p.reshape(n * oh * ow, kh * kw * c).astype(jnp.bfloat16)
    return p, (n, oh, ow)


def conv2d_pallas_nhwc(x_nhwc, w_oihw, b, stride, padding, slope):
    """Conv2d on NHWC activations (PyTorch (Cout,Cin,kh,kw) weights) + leaky-relu."""
    cout, cin, kh, kw = w_oihw.shape
    patches, (n, oh, ow) = _im2col_nhwc(x_nhwc, kh, kw, stride, padding)
    wmat = jnp.transpose(w_oihw, (2, 3, 1, 0)).reshape(kh * kw * cin, cout)
    out = _matmul_bias_act(patches, wmat, jnp.asarray(b, jnp.float32), slope=slope)
    return out.reshape(n, oh, ow, cout)                                   # NHWC


def conv2d_post_pallas(x_nhwc, w_oihw, b, stride, padding):
    """conv_post with Cout=1: VPU multiply + reduce kernel."""
    _, cin, kh, kw = w_oihw.shape
    patches, (n, oh, ow) = _im2col_nhwc(x_nhwc, kh, kw, stride, padding)
    M, K = patches.shape
    wrow = jnp.transpose(w_oihw, (2, 3, 1, 0)).reshape(1, K).astype(jnp.float32)
    b2 = jnp.asarray(b, jnp.float32).reshape(1, 1)
    tm = M if M <= 512 else 512
    out = pl.pallas_call(
        _conv1out_kernel,
        grid=(pl.cdiv(M, tm),),
        in_specs=[
            pl.BlockSpec((tm, K), lambda i: (i, 0)),
            pl.BlockSpec((1, K), lambda i: (0, 0)),
            pl.BlockSpec((1, 1), lambda i: (0, 0)),
        ],
        out_specs=pl.BlockSpec((tm, 1), lambda i: (i, 0)),
        out_shape=jax.ShapeDtypeStruct((M, 1), jnp.float32),
        compiler_params=pltpu.CompilerParams(
            dimension_semantics=("parallel",), vmem_limit_bytes=_VMEM_LIMIT),
        cost_estimate=pl.CostEstimate(
            flops=2 * M * K, transcendentals=0,
            bytes_accessed=M * K * 2 + K * 4 + M * 4),
    )(patches, wrow, b2)
    return out.reshape(n, oh, ow, 1)                                      # NHWC


def spectrogram_pallas(x, n_fft, hop_length, win_length):
    """torch.stft(x, center=True, window=None, return_complex=True).abs() equivalent."""
    b, t = x.shape
    pad = n_fft // 2
    xp = jnp.pad(x, ((0, 0), (pad, pad)), mode="reflect")
    n_frames = 1 + t // hop_length
    idx = (jnp.arange(n_frames) * hop_length)[:, None] + jnp.arange(n_fft)[None, :]
    frames = xp[:, idx]                                                   # (B, F, n_fft)
    # window=None -> rectangular window of length win_length, centered in n_fft.
    wl = (n_fft - win_length) // 2
    win = jnp.zeros((n_fft,), jnp.float32).at[wl:wl + win_length].set(1.0)
    frames = (frames * win).reshape(b * n_frames, n_fft).astype(jnp.bfloat16)

    nbins = n_fft // 2 + 1
    nn = jnp.arange(n_fft, dtype=jnp.float32)[:, None]
    kk = jnp.arange(nbins, dtype=jnp.float32)[None, :]
    ang = 2.0 * math.pi * nn * kk / n_fft
    dft_re = jnp.cos(ang).astype(jnp.bfloat16)
    dft_im = (-jnp.sin(ang)).astype(jnp.bfloat16)

    M = b * n_frames
    tm = M if M <= 256 else 256
    mag = pl.pallas_call(
        _stft_mag_kernel,
        grid=(pl.cdiv(M, tm),),
        in_specs=[
            pl.BlockSpec((tm, n_fft), lambda i: (i, 0)),
            pl.BlockSpec((n_fft, nbins), lambda i: (0, 0)),   # VMEM-resident
            pl.BlockSpec((n_fft, nbins), lambda i: (0, 0)),   # VMEM-resident
        ],
        out_specs=pl.BlockSpec((tm, nbins), lambda i: (i, 0)),
        out_shape=jax.ShapeDtypeStruct((M, nbins), jnp.float32),
        compiler_params=pltpu.CompilerParams(
            dimension_semantics=("parallel",), vmem_limit_bytes=_VMEM_LIMIT),
        cost_estimate=pl.CostEstimate(
            flops=4 * M * n_fft * nbins,
            transcendentals=M * nbins,
            bytes_accessed=M * n_fft * 2 + 2 * n_fft * nbins * 2 + M * nbins * 4),
    )(frames, dft_re, dft_im)
    return mag.reshape(b, n_frames, nbins).transpose(0, 2, 1)             # (B, bins, frames)


# ----------------------------- parameter setup -----------------------------

def _weight_norm_effective(v, g):
    norm = jnp.sqrt(jnp.sum(v * v, axis=(1, 2, 3), keepdims=True) + 1e-12)
    return g.reshape(-1, 1, 1, 1) * v / norm


def init_discriminator_r_params(key, channels=16, in_channels=1):
    conv_cfgs = [
        (in_channels, channels, (7, 5), (2, 2), (3, 2)),
        (channels, channels, (5, 3), (2, 1), (2, 1)),
        (channels, channels, (5, 3), (2, 2), (2, 1)),
        (channels, channels, (3, 3), (2, 1), (1, 1)),
        (channels, channels, (3, 3), (2, 2), (1, 1)),
    ]
    keys = jax.random.split(key, len(conv_cfgs) + 1)
    convs = []
    for (cin, cout, ks, st, pd), k in zip(conv_cfgs, keys[:-1]):
        k1, k2, k3 = jax.random.split(k, 3)
        v = jax.random.normal(k1, (cout, cin, ks[0], ks[1]), jnp.float32) * 0.05
        g = 1.0 + 0.1 * jax.random.normal(k2, (cout,), jnp.float32)
        w = _weight_norm_effective(v, g)
        b = jax.random.normal(k3, (cout,), jnp.float32) * 0.05
        convs.append((w, b, st, pd))
    k1, k2, k3 = jax.random.split(keys[-1], 3)
    vp = jax.random.normal(k1, (1, channels, 3, 3), jnp.float32) * 0.05
    gp = 1.0 + 0.1 * jax.random.normal(k2, (1,), jnp.float32)
    wp = _weight_norm_effective(vp, gp)
    bp = jax.random.normal(k3, (1,), jnp.float32) * 0.05
    conv_post = (wp, bp, (1, 1), (1, 1))
    return convs, conv_post


def init_multi_resolution_params(key, resolutions, channels=16, in_channels=1,
                                 num_embeddings=None):
    keys = jax.random.split(key, len(resolutions))
    params = []
    for k in keys:
        convs, conv_post = init_discriminator_r_params(k, channels, in_channels)
        emb_w = (jnp.zeros((num_embeddings, channels), jnp.float32)
                 if num_embeddings is not None else None)   # torch zero-inits emb
        params.append((convs, conv_post, emb_w))
    return params


# ----------------------------- forward passes -----------------------------

def discriminator_r_forward(x, convs, conv_post, resolution, lrelu_slope=0.1,
                            emb_weight=None, cond_embedding_id=None):
    n_fft, hop_length, win_length = resolution
    spec = spectrogram_pallas(x, n_fft, hop_length, win_length)   # (B, bins, frames)
    h = spec[..., None]                                           # NHWC, C=1
    fmap = []
    for (w, b, st, pd) in convs:
        h = conv2d_pallas_nhwc(h, w, b, st, pd, slope=lrelu_slope)
        fmap.append(jnp.transpose(h, (0, 3, 1, 2)))               # NCHW feature map
    if cond_embedding_id is not None and emb_weight is not None:
        emb = emb_weight[cond_embedding_id]                       # (C,)
        cond = jnp.sum(h * emb.reshape(1, 1, 1, -1), axis=-1, keepdims=True)
        cond = jnp.transpose(cond, (0, 3, 1, 2))                  # (B,1,H,W)
    else:
        cond = 0.0
    wp, bp, st, pd = conv_post
    out = jnp.transpose(conv2d_post_pallas(h, wp, bp, st, pd), (0, 3, 1, 2))  # NCHW
    fmap.append(out)
    out = out + cond
    return out.reshape(out.shape[0], -1), fmap                    # flatten(x, 1, -1)


def multi_resolution_discriminator_forward(y, y_hat, params, resolutions,
                                           bandwidth_id=None, lrelu_slope=0.1):
    y_d_rs, y_d_gs, fmap_rs, fmap_gs = [], [], [], []
    for (convs, conv_post, emb_w), res in zip(params, resolutions):
        y_d_r, fmap_r = discriminator_r_forward(
            y, convs, conv_post, res, lrelu_slope, emb_w, bandwidth_id)
        y_d_g, fmap_g = discriminator_r_forward(
            y_hat, convs, conv_post, res, lrelu_slope, emb_w, bandwidth_id)
        y_d_rs.append(y_d_r)
        fmap_rs.append(fmap_r)
        y_d_gs.append(y_d_g)
        fmap_gs.append(fmap_g)
    return y_d_rs, y_d_gs, fmap_rs, fmap_gs


# ----------------------------- demo -----------------------------

if __name__ == "__main__":
    key = jax.random.PRNGKey(0)
    k_y, k_g, k_p = jax.random.split(key, 3)

    # Small stand-ins for the defaults ((1024,256,1024),(2048,512,2048),(512,128,512)), ch=64.
    resolutions = ((64, 16, 64), (128, 32, 128), (32, 8, 32))
    batch, seq, channels = 2, 256, 16

    y = jax.random.normal(k_y, (batch, seq), jnp.float32)
    y_hat = jax.random.normal(k_g, (batch, seq), jnp.float32)
    params = init_multi_resolution_params(k_p, resolutions, channels=channels)

    y_d_rs, y_d_gs, fmap_rs, fmap_gs = multi_resolution_discriminator_forward(
        y, y_hat, params, resolutions)

    for o in y_d_rs + y_d_gs:
        jax.block_until_ready(o)
    for fl in fmap_rs + fmap_gs:
        for f in fl:
            jax.block_until_ready(f)

    print("KERNEL_OK")
</pallas_src>

<mosaic_0001>
module attributes {stable_mosaic.version = 11 : i64} {
  func.func @_stft_mag_kernel(%arg0: i32, %arg1: memref<34x64xbf16, #tpu.memory_space<vmem>>, %arg2: memref<64x33xbf16, #tpu.memory_space<vmem>>, %arg3: memref<64x33xbf16, #tpu.memory_space<vmem>>, %arg4: memref<34x33xf32, #tpu.memory_space<vmem>>) attributes {dimension_semantics = [#tpu.dimension_semantics<parallel>], iteration_bounds = array<i64: 1>, scalar_prefetch = 0 : i64, scratch_operands = 0 : i64, tpu.core_type = #tpu.core_type<tc>, window_params = [{transform_indices = @transform_0, window_bounds = array<i64: 34, 64>}, {pipeline_mode = #tpu.pipeline_mode<synchronous>, transform_indices = @transform_1, window_bounds = array<i64: 64, 33>}, {pipeline_mode = #tpu.pipeline_mode<synchronous>, transform_indices = @transform_2, window_bounds = array<i64: 64, 33>}, {transform_indices = @transform_3, window_bounds = array<i64: 34, 33>}]} {
    %c0 = arith.constant 0 : index
    %c0_0 = arith.constant 0 : index
    %0 = vector.load %arg1[%c0, %c0_0] : memref<34x64xbf16, #tpu.memory_space<vmem>>, vector<34x64xbf16>
    %c0_1 = arith.constant 0 : index
    %c0_2 = arith.constant 0 : index
    %1 = vector.load %arg2[%c0_1, %c0_2] : memref<64x33xbf16, #tpu.memory_space<vmem>>, vector<64x33xbf16>
    %cst = arith.constant dense<0.000000e+00> : vector<34x33xf32>
    %2 = tpu.matmul %0, %1, %cst {dimension_numbers = #tpu.dot_dimension_numbers<[1], [0], [0], [1], [0, 0, 1, 1], [], []>} : vector<34x64xbf16>, vector<64x33xbf16>, vector<34x33xf32> -> vector<34x33xf32>
    %c0_3 = arith.constant 0 : index
    %c0_4 = arith.constant 0 : index
    %3 = vector.load %arg3[%c0_3, %c0_4] : memref<64x33xbf16, #tpu.memory_space<vmem>>, vector<64x33xbf16>
    %cst_5 = arith.constant dense<0.000000e+00> : vector<34x33xf32>
    %4 = tpu.matmul %0, %3, %cst_5 {dimension_numbers = #tpu.dot_dimension_numbers<[1], [0], [0], [1], [0, 0, 1, 1], [], []>} : vector<34x64xbf16>, vector<64x33xbf16>, vector<34x33xf32> -> vector<34x33xf32>
    %5 = arith.mulf %2, %2 : vector<34x33xf32>
    %6 = arith.mulf %4, %4 : vector<34x33xf32>
    %7 = arith.addf %5, %6 : vector<34x33xf32>
    %8 = math.sqrt %7 : vector<34x33xf32>
    %c0_6 = arith.constant 0 : index
    %c0_7 = arith.constant 0 : index
    %9 = vector.load %arg4[%c0_6, %c0_7] : memref<34x33xf32, #tpu.memory_space<vmem>>, vector<34x33xf32>
    tpu.vector_store %arg4[%c0_6, %c0_7], %8 {strides = array<i32>} : memref<34x33xf32, #tpu.memory_space<vmem>>, vector<34x33xf32>,
    return
  }
  func.func @transform_0(%arg0: i32) -> (i32, i32) {
    %c0_i32 = arith.constant 0 : i32
    %c0_i32_0 = arith.constant 0 : i32
    return %arg0, %c0_i32 : i32, i32
  }
  func.func @transform_1(%arg0: i32) -> (i32, i32) {
    %c0_i32 = arith.constant 0 : i32
    %c0_i32_0 = arith.constant 0 : i32
    %c0_i32_1 = arith.constant 0 : i32
    return %c0_i32, %c0_i32_0 : i32, i32
  }
  func.func @transform_2(%arg0: i32) -> (i32, i32) {
    %c0_i32 = arith.constant 0 : i32
    %c0_i32_0 = arith.constant 0 : i32
    %c0_i32_1 = arith.constant 0 : i32
    return %c0_i32, %c0_i32_0 : i32, i32
  }
  func.func @transform_3(%arg0: i32) -> (i32, i32) {
    %c0_i32 = arith.constant 0 : i32
    %c0_i32_0 = arith.constant 0 : i32
    return %arg0, %c0_i32 : i32, i32
  }
}

</mosaic_0001>

<bundles_post_ra>
// kernel: tpu_custom_call.1
= control target key start
LH: loop header
LB: loop body
LE: loop exit
PB: predicated region body
PF: predicated region fallthrough
CT: control target
= control target key end

     0   :  { %v414_v1 = vmov 0.0   ;;  %vm415_vm0 = vmmov 0   ;;  %s494_s0 = inlined_call_operand.vmem [shape: bf16[34,64], index: 0, kind: input, shape index: {}]   ;;  %s495_s1 = inlined_call_operand.vmem [shape: bf16[64,33], index: 1, kind: input, shape index: {}]   ;;  %s496_s2 = inlined_call_operand.vmem [shape: bf16[64,33], index: 2, kind: input, shape index: {}]   ;;  %s497_s3 = inlined_call_operand.hbm [shape: f32[34,33], index: 3, kind: output, shape index: {}]  }
   0x1   :  { %v369_v0 = vld [vmem:[%s495_s1] sm:$0xff]   ;;  %324 = vmatprep.subr.bf16.mxu0 %v414_v1  ;;  %344 = vmatprep.subr.bf16.mxu1 %v414_v1  ;;  %v371_v3 = vld [vmem:[%s495_s1 + $0x8] sm:$0xff]   ;;  %v373_v5 = vld [vmem:[%s495_s1 + $0x10] sm:$0xff]  }
   0x2   :  { %v370_v2 = vld [vmem:[%s496_s2] sm:$0xff]   ;;  %325 = vmatpush3.bf16.msra.mxu0 %v369_v0  ;;  %332 = vmatprep.mubr.msk.bf16.mxu0 %vm415_vm0, %v414_v1  ;;  %v372_v4 = vld [vmem:[%s496_s2 + $0x8] sm:$0xff]   ;;  %v374_v6 = vld [vmem:[%s496_s2 + $0x10] sm:$0xff]  }
   0x3   :  { %345 = vmatpush3.bf16.msra.mxu1 %v370_v2  ;;  %326 = vmatprep.subr.bf16.mxu0 %v414_v1  ;;  %v375_v7 = vld [vmem:[%s495_s1 + $0x18] sm:$0xff]  }
   0x4   :  { %346 = vmatprep.subr.bf16.mxu1 %v414_v1  ;;  %352 = vmatprep.mubr.msk.bf16.mxu1 %vm415_vm0, %v414_v1  ;;  %v376_v8 = vld [vmem:[%s496_s2 + $0x18] sm:$0xff]  }
   0x6   :  { %327 = vmatpush3.bf16.msra.mxu0 %v371_v3 }
   0x7   :  { %347 = vmatpush3.bf16.msra.mxu1 %v372_v4  ;;  %328 = vmatprep.subr.bf16.mxu0 %v414_v1 }
   0x8   :  { %348 = vmatprep.subr.bf16.mxu1 %v414_v1 }
   0xa   :  { %329 = vmatpush3.bf16.msra.mxu0 %v373_v5 }
   0xb   :  { %349 = vmatpush3.bf16.msra.mxu1 %v374_v6  ;;  %330 = vmatprep.subr.bf16.mxu0 %v414_v1 }
   0xc   :  { %8 = vsyncpa [#allocation3], 0  ;;  %350 = vmatprep.subr.bf16.mxu1 %v414_v1  ;;  %v377_v9 = vld [vmem:[%s494_s0] sm:$0xff]   ;;  %vm66_vm1 = vcmask 523264   ;;  %v378_v10 = vld [vmem:[%s494_s0 + $0x8] sm:$0xff]   ;;  %vm270_vm2 = vcmask 269312  }
   0xd   :  { %v379_v11 = vld [vmem:[%s494_s0 + $0x10] ss:$0 sps:$4 sm:$0x11]   ;;  %s416_s0 = smov [#allocation2]   ;;  %vm275_vm12 = vcmask 263168  }
   0xe   :  { %331 = vmatpush3.bf16.msra.mxu0 %v375_v7  ;;  %s282_s5 = sshll.u32 %s416_s0, 4  ;;  %s283_s5 = int_to_ptr.vmem [resolvable:$true] %s282_s5 }
   0xf   :  { %351 = vmatpush3.bf16.msra.mxu1 %v376_v8  ;;  %s390_s6 = scalar_lea.vmem %s283_s5, 640  ;;  %p395_p1 = scmp.lt.s32.totalorder %s283_s5, %s283_s5 }
  0x10   :  { %p391_p0 = scmp.ne.s32.totalorder %s283_s5, %s390_s6  ;;  %p396_p2 = scmp.lt.s32.totalorder %s390_s6, %s390_s6 }
  0x11   :  { %333 = vmatmul.mubr.msk.bf16.vlgmr.msra.gmra.mrb[0].mxu0 %vm66_vm1, %v377_v9 }
  0x12   :  { %353 = vmatmul.mubr.msk.bf16.vlgmr.msra.gmra.mrb[0].mxu1 %vm66_vm1, %v377_v9  ;;  %336 = vmatprep.mubr.msk.bf16.mxu0 %vm415_vm0, %v414_v1  ;;  %p397_p3 = por %p396_p2, %p395_p1 }
  0x13   :  { %356 = vmatprep.mubr.msk.bf16.mxu1 %vm415_vm0, %v414_v1 }
  0x14   :  { %p398_p4 = pnand %p397_p3, %p391_p0 }
  0x19   :  { %337 = vmatmul.mubr.msk.bf16.gmra.mrb[4].mxu0 %vm66_vm1, %v378_v10 }
  0x1a   :  { %357 = vmatmul.mubr.msk.bf16.gmra.mrb[4].mxu1 %vm66_vm1, %v378_v10  ;;  %340 = vmatprep.mubr.msk.bf16.mxu0 %vm415_vm0, %v414_v1 }
  0x1b   :  { %360 = vmatprep.mubr.msk.bf16.mxu1 %vm415_vm0, %v414_v1 }
  0x21   :  { %341 = vmatmul.mubr.msk.bf16.gmra.mrb[8].mxu0 %vm66_vm1, %v379_v11 }
  0x22   :  { %361 = vmatmul.mubr.msk.bf16.gmra.mrb[8].mxu1 %vm66_vm1, %v379_v11 }
  0xe4   :  { %v110_v12 = vpop.f32.mrb[0].mxu0 }
  0xe5   :  { %v220_v13 = vmul.f32 %v110_v12, %v110_v12  ;;  %v198_v14 = vpop.f32.mrb[0].mxu1  ;;  %v334_v15 = vpop.f32.mrb[1].mxu0 }
  0xe6   :  { %v225_v16 = vmul.f32 %v198_v14, %v198_v14  ;;  %v354_v17 = vpop.f32.mrb[1].mxu1  ;;  %v113_v18 = vpop.f32.mrb[2].mxu0 }
  0xe7   :  { %v221_v19 = vmul.f32 %v113_v18, %v113_v18  ;;  %v201_v20 = vpop.f32.mrb[2].mxu1  ;;  %v335_v21 = vpop.f32.mrb[3].mxu0 }
  0xe8   :  { %v230_v22 = vadd.f32 %v225_v16, %v220_v13  ;;  %v226_v23 = vmul.f32 %v201_v20, %v201_v20  ;;  %v355_v24 = vpop.f32.mrb[3].mxu1 }
  0xea   :  { %380 = vrsqrt.f32 %v230_v22  ;;  %v231_v25 = vadd.f32 %v226_v23, %v221_v19  ;;  %vm237_vm3 = vcmp.eq.f32.partialorder %v230_v22, inf  ;;  %v240_v45 = vand.u32 2147483648, %v230_v22 }
  0xeb   :  { %vm239_vm4 = vcmp.eq.f32.partialorder %v230_v22, 0.0 }
  0xec   :  { %v118_v26 = vpop.f32.mrb[4].mxu0  ;;  %382 = vrsqrt.f32 %v231_v25  ;;  %vm244_vm5 = vcmp.eq.f32.partialorder %v231_v25, inf  ;;  %v247_v58 = vand.u32 2147483648, %v231_v25  ;;  %vm246_vm6 = vcmp.eq.f32.partialorder %v231_v25, 0.0 }
  0xed   :  { %v206_v27 = vpop.f32.mrb[4].mxu1  ;;  %v338_v28 = vpop.f32.mrb[5].mxu0  ;;  %v222_v29 = vmul.f32 %v118_v26, %v118_v26 }
  0xee   :  { %v227_v30 = vmul.f32 %v206_v27, %v206_v27  ;;  %v358_v31 = vpop.f32.mrb[5].mxu1  ;;  %v121_v32 = vpop.f32.mrb[6].mxu0 }
  0xef   :  { %v223_v33 = vmul.f32 %v121_v32, %v121_v32  ;;  %v209_v34 = vpop.f32.mrb[6].mxu1  ;;  %v339_v35 = vpop.f32.mrb[7].mxu0 }
  0xf0   :  { %v232_v36 = vadd.f32 %v227_v30, %v222_v29  ;;  %v228_v37 = vmul.f32 %v209_v34, %v209_v34  ;;  %v359_v38 = vpop.f32.mrb[7].mxu1 }
  0xf2   :  { %384 = vrsqrt.f32 %v232_v36  ;;  %v233_v39 = vadd.f32 %v228_v37, %v223_v33  ;;  %vm251_vm7 = vcmp.eq.f32.partialorder %v232_v36, inf  ;;  %v254_v63 = vand.u32 2147483648, %v232_v36 }
  0xf3   :  { %vm253_vm8 = vcmp.eq.f32.partialorder %v232_v36, 0.0 }
  0xf4   :  { %v381_v40 = vpop.eup %380  ;;  %v126_v41 = vpop.f32.mrb[8].mxu0  ;;  %386 = vrsqrt.f32 %v233_v39  ;;  %vm258_vm9 = vcmp.eq.f32.partialorder %v233_v39, inf  ;;  %v261_v4 = vand.u32 2147483648, %v233_v39  ;;  %vm260_vm10 = vcmp.eq.f32.partialorder %v233_v39, 0.0 }
  0xf5   :  { %v236_v42 = vmul.f32 %v381_v40, %v230_v22  ;;  %v214_v43 = vpop.f32.mrb[8].mxu1  ;;  %v342_v44 = vpop.f32.mrb[9].mxu0  ;;  %v224_v46 = vmul.f32 %v126_v41, %v126_v41 }
  0xf6   :  { %v229_v47 = vmul.f32 %v214_v43, %v214_v43  ;;  %v362_v48 = vpop.f32.mrb[9].mxu1  ;;  %v129_v49 = vpop.f32.mrb[10].mxu0 }
  0xf7   :  { %v383_v50 = vpop.eup %382  ;;  %v238_v51 = vsel %vm237_vm3, %v230_v22, %v236_v42  ;;  %v217_v52 = vpop.f32.mrb[10].mxu1 }
  0xf8   :  { %v343_v53 = vpop.f32.mrb[11].mxu0  ;;  %v243_v54 = vmul.f32 %v383_v50, %v231_v25  ;;  %v234_v55 = vadd.f32 %v229_v47, %v224_v46  ;;  %v363_v56 = vpop.f32.mrb[11].mxu1  ;;  %v241_v57 = vsel %vm239_vm4, %v240_v45, %v238_v51 }
  0xf9   :  { %271 = vst.msk [vmem:[#allocation2] sm:$0xff] %vm270_vm2, %v241_v57 }
  0xfa   :  { %v245_v59 = vsel %vm244_vm5, %v231_v25, %v243_v54  ;;  %388 = vrsqrt.f32 %v234_v55  ;;  %vm265_vm11 = vcmp.eq.f32.partialorder %v234_v55, inf  ;;  %v268_v9 = vand.u32 2147483648, %v234_v55 }
  0xfb   :  { %v248_v60 = vsel %vm246_vm6, %v247_v58, %v245_v59  ;;  %vm267_vm13 = vcmp.eq.f32.partialorder %v234_v55, 0.0 }
  0xfc   :  { %v385_v61 = vpop.eup %384  ;;  %272 = vst.msk [vmem:[#allocation2 + $0x8] sm:$0xff] %vm270_vm2, %v248_v60 }
  0xfd   :  { %v250_v62 = vmul.f32 %v385_v61, %v232_v36 }
  0xfe   :  { %v387_v0 = vpop.eup %386 }
  0xff   :  { %v252_v1 = vsel %vm251_vm7, %v232_v36, %v250_v62  ;;  %v257_v2 = vmul.f32 %v387_v0, %v233_v39 }
 0x100   :  { %v255_v3 = vsel %vm253_vm8, %v254_v63, %v252_v1 }
 0x101   :  { %273 = vst.msk [vmem:[#allocation2 + $0x10] sm:$0xff] %vm270_vm2, %v255_v3  ;;  %v259_v5 = vsel %vm258_vm9, %v233_v39, %v257_v2 }
 0x102   :  { %v262_v6 = vsel %vm260_vm10, %v261_v4, %v259_v5 }
 0x103   :  { %274 = vst.msk [vmem:[#allocation2 + $0x18] sm:$0xff] %vm270_vm2, %v262_v6 }
 0x104   :  { %v389_v7 = vpop.eup %388 }
 0x105   :  { %v264_v8 = vmul.f32 %v389_v7, %v234_v55 }
 0x107   :  { %v266_v10 = vsel %vm265_vm11, %v234_v55, %v264_v8 }
 0x108   :  { %v269_v11 = vsel %vm267_vm13, %v268_v9, %v266_v10 }
 0x109   :  { %276 = vst.msk [vmem:[#allocation2 + $0x20] sm:$0x3] %vm275_vm12, %v269_v11 }
 0x10a   :  { %401 = shalt.err (!%p398_p4)
}
 0x10b   :  { %s402_s9 = scalar_lea.hbm %s497_s3, 640 }
 0x10c   :  { %p403_p5 = scmp.ne.s32.totalorder %s497_s3, %s402_s9  ;;  %p406_p6 = scmp.lt.u32.totalorder %s402_s9, %s497_s3 }
 0x10e   :  { %p408_p7 = pnand %p406_p6, %p403_p5 }
 0x110   :  { %411 = shalt.err (!%p408_p7)
}
 0x111   :  { %s417_s14 = smov 128   ;;  %s418_s15 = smov 8  }
 0x112   :  { %288 = dma.vmem_to_hbm [thread:$0]  %s283_s5, 640, %s497_s3, [#allocation3], %s417_s14, %s417_s14, %s418_s15  }
 0x113   :  { %412 = dma.done.wait [#allocation3], 640  }
 0x114   :  { %413 = vsyncadd [#allocation3], 4294966656 }
 0x115   :  { %292 = vsyncpa [#allocation3], 1 }

</bundles_post_ra>
